<compile_context>
chip_gen: v7x
topology: tpu7x:2x2x1
jax: 0.10.0
libtpu: 0.0.40
codegen_flags: <defaults>
</compile_context>

<pallas_src>
import jax
import jax.numpy as jnp
from jax import lax
from jax.experimental import pallas as pl
from jax.experimental.pallas import tpu as pltpu


def _round_up(x, m):
    return (x + m - 1) // m * m


def _relcoord_conv_kernel(patches_ref, wf_ref, slab_ref, out_ref):
    """One lane tile per grid step (lane-dense layout).

    patches_ref : VMEM (Kp, T)   bf16 -- im2col'd feature taps; lanes = N*HW tile
    wf_ref      : VMEM (Cop, Kp) bf16 -- conv feature weights (grid-invariant)
    slab_ref    : VMEM (Cop, T)  f32  -- batch-invariant coord-conv + bias slab tile
    out_ref     : VMEM (Cop, T)  f32
    """
    acc = jnp.dot(wf_ref[...], patches_ref[...],
                  preferred_element_type=jnp.float32)       # MXU, f32 accumulation
    out_ref[...] = (acc + slab_ref[...]).astype(out_ref.dtype)


def _pick_lane_tile(hw, total_lanes, k_pad, cout_pad,
                    vmem_budget_bytes=24 << 20, max_tile=2048):
    """Largest lane tile (multiple of 128, divisor of HW, <= max_tile) whose
    double-buffered working set fits the VMEM budget, preferring >= 4 grid
    steps so both v7x TensorCores pipeline."""
    assert hw % 128 == 0, "H*W must be a multiple of 128 for lane-dense tiling"

    def working_set(t):
        return (2 * k_pad * t * 2          # patches, bf16, double-buffered
                + 2 * cout_pad * t * 4     # output, f32, double-buffered
                + 2 * cout_pad * t * 4     # slab, f32 (worst-case double-buffered)
                + cout_pad * k_pad * 2)    # weights, bf16, single copy

    cands = [t for t in range(128, min(hw, max_tile) + 1, 128)
             if hw % t == 0 and working_set(t) <= vmem_budget_bytes]
    if not cands:
        cands = [128]
    stepped = [t for t in cands if total_lanes // t >= 4]
    return max(stepped) if stepped else max(cands)


def relative_coord_conv(x_nchw, point, weight, bias, *, spatial_size):
    """x_nchw: (N, Cf, H, W) f32; point: (1, 2) f32;
    weight: (3, 3, Cf+2, Cout) f32 (HWIO); bias: (Cout,) f32.
    Returns (N, Cout, H, W) f32."""
    N, C, H, W = x_nchw.shape
    Kh, Kw, Cin, Cout = weight.shape
    assert (Kh, Kw) == (3, 3) and Cin == C + 2
    HW = H * W
    total_lanes = N * HW

    K = 9 * C
    k_pad = _round_up(K, 16)        # bf16 sublane packing (aim for 128 at prod sizes)
    cout_pad = _round_up(Cout, 8)   # f32 output sublanes

    # --- im2col of the feature channels, fully in bf16 (no f32 round trip),
    #     laid out (9*C, N*HW) so the batch folds into the lane axis ----------
    xt = jnp.transpose(x_nchw.astype(jnp.bfloat16), (1, 0, 2, 3))      # (C, N, H, W)
    xpad = jnp.pad(xt, ((0, 0), (0, 0), (1, 1), (1, 1)))
    taps = [xpad[:, :, kh:kh + H, kw:kw + W] for kh in range(3) for kw in range(3)]
    patches = jnp.stack(taps, axis=0).reshape(K, total_lanes)          # (9C, N*HW) bf16
    if k_pad != K:
        patches = jnp.pad(patches, ((0, k_pad - K), (0, 0)))

    # --- weights, split into feature / coord parts, (Cout, K) layout ---------
    w_taps = weight.astype(jnp.float32).reshape(9, Cin, Cout)          # k = kh*3 + kw
    w_feat_t = jnp.transpose(w_taps[:, :C, :], (2, 0, 1)).reshape(Cout, K)
    w_feat_t = jnp.pad(w_feat_t, ((0, cout_pad - Cout), (0, k_pad - K)))
    w_feat_t = w_feat_t.astype(jnp.bfloat16)                           # (Cop, Kp)
    w_coord_t = jnp.transpose(w_taps[:, C:, :], (2, 0, 1)).reshape(Cout, 2 * 9)

    # --- batch-invariant relative-coordinate + bias slab (Cout_pad, HW), f32 -
    # (hoisted out of the kernel: identical for every batch element)
    rows = lax.broadcasted_iota(jnp.float32, (H, W), 0)
    cols = lax.broadcasted_iota(jnp.float32, (H, W), 1)
    py = point[0, 0].astype(jnp.float32)
    px = point[0, 1].astype(jnp.float32)
    inv_half = 2.0 / float(spatial_size)                 # == 1 / (spatial_size / 2)
    coord_rows = []
    for kh in range(3):
        for kw in range(3):
            rr = rows + float(kh - 1)                    # neighbor row for this tap
            cc = cols + float(kw - 1)                    # neighbor col for this tap
            valid = (rr >= 0) & (rr < H) & (cc >= 0) & (cc < W)   # zero-padded border
            coord_rows.append(jnp.where(valid, (rr - py) * inv_half, 0.0).reshape(HW))
            coord_rows.append(jnp.where(valid, (cc - px) * inv_half, 0.0).reshape(HW))
    coords_mat = jnp.stack(coord_rows, axis=0)                         # (18, HW)
    coord_slab = w_coord_t @ coords_mat + bias.astype(jnp.float32).reshape(Cout, 1)
    coord_slab = jnp.pad(coord_slab, ((0, cout_pad - Cout), (0, 0)))   # (Cop, HW)

    # --- lane-tiled GEMM: out(Cout, N*HW) = Wf @ patches + slab --------------
    lane_tile = _pick_lane_tile(HW, total_lanes, k_pad, cout_pad)
    blocks_per_image = HW // lane_tile
    grid = (total_lanes // lane_tile,)
    slab_invariant = blocks_per_image == 1
    slab_index_map = ((lambda t: (0, 0)) if slab_invariant
                      else (lambda t: (0, t % blocks_per_image)))

    def _call(single_buffer_invariants):
        def spec(shape, index_map, invariant):
            if single_buffer_invariants and invariant:
                return pl.BlockSpec(shape, index_map, pipeline_mode=pl.Buffered(1))
            return pl.BlockSpec(shape, index_map)

        return pl.pallas_call(
            _relcoord_conv_kernel,
            out_shape=jax.ShapeDtypeStruct((cout_pad, total_lanes), jnp.float32),
            grid=grid,
            in_specs=[
                spec((k_pad, lane_tile), lambda t: (0, t), False),       # patches tile
                spec((cout_pad, k_pad), lambda t: (0, 0), True),         # weights (invariant)
                spec((cout_pad, lane_tile), slab_index_map, slab_invariant),
            ],
            out_specs=pl.BlockSpec((cout_pad, lane_tile), lambda t: (0, t)),
            compiler_params=pltpu.CompilerParams(
                dimension_semantics=("parallel",)),
        )(patches, w_feat_t, coord_slab)

    try:
        out_flat = _call(True)
    except Exception:
        # pl.Buffered(1) single-buffering unsupported on this jax build;
        # fall back to default double-buffering (identical results).
        out_flat = _call(False)

    out = out_flat.reshape(cout_pad, N, H, W)[:Cout]       # drop Cout padding
    return jnp.transpose(out, (1, 0, 2, 3))                # (N, Cout, H, W)


def relative_coord_conv_reference(x_nchw, point, weight, bias, *, spatial_size):
    """Pure-JAX reference: concat normalized coords, 3x3 SAME conv."""
    N, C, H, W = x_nchw.shape
    x_nhwc = jnp.transpose(x_nchw, (0, 2, 3, 1)).astype(jnp.float32)
    rows = lax.broadcasted_iota(jnp.float32, (H, W), 0)
    cols = lax.broadcasted_iota(jnp.float32, (H, W), 1)
    nh = (rows - point[0, 0]) / (spatial_size / 2.0)
    nw = (cols - point[0, 1]) / (spatial_size / 2.0)
    coord = jnp.broadcast_to(jnp.stack([nh, nw], axis=-1)[None], (N, H, W, 2))
    xin = jnp.concatenate([x_nhwc, coord], axis=-1)
    out = lax.conv_general_dilated(
        xin, weight, window_strides=(1, 1), padding="SAME",
        dimension_numbers=("NHWC", "HWIO", "NHWC"),
        preferred_element_type=jnp.float32)
    out = out + bias.reshape(1, 1, 1, -1)
    return jnp.transpose(out, (0, 3, 1, 2))


if __name__ == "__main__":
    num_input, num_output, data_dim = 4, 8, 2
    N, H, W = 2, 16, 16
    spatial_size = 16

    key = jax.random.PRNGKey(0)
    k1, k2, k3, k4 = jax.random.split(key, 4)
    x = jax.random.normal(k1, (N, num_input, H, W), jnp.float32)
    point = jax.random.uniform(k2, (1, data_dim), jnp.float32, 0.0, float(spatial_size))

    cin = num_input + data_dim
    fan_in = float(cin * 3 * 3)
    weight = jax.random.normal(k3, (3, 3, cin, num_output), jnp.float32) / (fan_in ** 0.5)
    bias = jax.random.normal(k4, (num_output,), jnp.float32) * 0.01

    out = relative_coord_conv(x, point, weight, bias, spatial_size=spatial_size)
    out = jax.block_until_ready(out)

    ref = relative_coord_conv_reference(x, point, weight, bias, spatial_size=spatial_size)
    assert out.shape == (N, num_output, H, W)
    max_err = float(jnp.max(jnp.abs(out - ref)))
    assert jnp.allclose(out, ref, rtol=2e-2, atol=2e-2), f"max abs err = {max_err}"
    print("KERNEL_OK")
</pallas_src>

<mosaic_0001>
module attributes {stable_mosaic.version = 11 : i64} {
  func.func @_relcoord_conv_kernel(%arg0: i32, %arg1: memref<48x128xbf16, #tpu.memory_space<vmem>>, %arg2: memref<8x48xbf16, #tpu.memory_space<vmem>>, %arg3: memref<8x128xf32, #tpu.memory_space<vmem>>, %arg4: memref<8x128xf32, #tpu.memory_space<vmem>>) attributes {dimension_semantics = [#tpu.dimension_semantics<parallel>], iteration_bounds = array<i64: 4>, scalar_prefetch = 0 : i64, scratch_operands = 0 : i64, tpu.core_type = #tpu.core_type<tc>, window_params = [{transform_indices = @transform_0, window_bounds = array<i64: 48, 128>}, {pipeline_mode = #tpu.pipeline_mode<synchronous>, transform_indices = @transform_1, window_bounds = array<i64: 8, 48>}, {transform_indices = @transform_2, window_bounds = array<i64: 8, 128>}, {transform_indices = @transform_3, window_bounds = array<i64: 8, 128>}]} {
    %c0 = arith.constant 0 : index
    %c0_0 = arith.constant 0 : index
    %0 = vector.load %arg2[%c0, %c0_0] : memref<8x48xbf16, #tpu.memory_space<vmem>>, vector<8x48xbf16>
    %c0_1 = arith.constant 0 : index
    %c0_2 = arith.constant 0 : index
    %1 = vector.load %arg1[%c0_1, %c0_2] : memref<48x128xbf16, #tpu.memory_space<vmem>>, vector<48x128xbf16>
    %cst = arith.constant dense<0.000000e+00> : vector<8x128xf32>
    %2 = tpu.matmul %0, %1, %cst {dimension_numbers = #tpu.dot_dimension_numbers<[1], [0], [0], [1], [0, 0, 1, 1], [], []>} : vector<8x48xbf16>, vector<48x128xbf16>, vector<8x128xf32> -> vector<8x128xf32>
    %c0_3 = arith.constant 0 : index
    %c0_4 = arith.constant 0 : index
    %3 = vector.load %arg3[%c0_3, %c0_4] : memref<8x128xf32, #tpu.memory_space<vmem>>, vector<8x128xf32>
    %4 = arith.addf %2, %3 : vector<8x128xf32>
    %c0_5 = arith.constant 0 : index
    %c0_6 = arith.constant 0 : index
    %5 = vector.load %arg4[%c0_5, %c0_6] : memref<8x128xf32, #tpu.memory_space<vmem>>, vector<8x128xf32>
    tpu.vector_store %arg4[%c0_5, %c0_6], %4 {strides = array<i32>} : memref<8x128xf32, #tpu.memory_space<vmem>>, vector<8x128xf32>,
    return
  }
  func.func @transform_0(%arg0: i32) -> (i32, i32) {
    %c0_i32 = arith.constant 0 : i32
    %c0_i32_0 = arith.constant 0 : i32
    return %c0_i32, %arg0 : i32, i32
  }
  func.func @transform_1(%arg0: i32) -> (i32, i32) {
    %c0_i32 = arith.constant 0 : i32
    %c0_i32_0 = arith.constant 0 : i32
    %c0_i32_1 = arith.constant 0 : i32
    return %c0_i32, %c0_i32_0 : i32, i32
  }
  func.func @transform_2(%arg0: i32) -> (i32, i32) {
    %c2_i32 = arith.constant 2 : i32
    %c0_i32 = arith.constant 0 : i32
    %0 = arith.cmpi eq, %c2_i32, %c0_i32 : i32
    %c1_i32 = arith.constant 1 : i32
    %1 = arith.select %0, %c1_i32, %c2_i32 : i32
    %2 = arith.remsi %arg0, %1 : i32
    %c0_i32_0 = arith.constant 0 : i32
    %3 = arith.cmpi ne, %2, %c0_i32_0 : i32
    %c0_i32_1 = arith.constant 0 : i32
    %4 = arith.cmpi slt, %2, %c0_i32_1 : i32
    %c0_i32_2 = arith.constant 0 : i32
    %5 = arith.cmpi slt, %1, %c0_i32_2 : i32
    %6 = arith.xori %4, %5 : i1
    %7 = arith.andi %6, %3 : i1
    %8 = arith.addi %2, %1 : i32
    %9 = arith.select %7, %8, %2 : i32
    %c0_i32_3 = arith.constant 0 : i32
    %c0_i32_4 = arith.constant 0 : i32
    return %c0_i32_3, %9 : i32, i32
  }
  func.func @transform_3(%arg0: i32) -> (i32, i32) {
    %c0_i32 = arith.constant 0 : i32
    %c0_i32_0 = arith.constant 0 : i32
    return %c0_i32, %arg0 : i32, i32
  }
}

module attributes {stable_mosaic.version = 11 : i64} {
  func.func @_relcoord_conv_kernel(%arg0: i32, %arg1: memref<48x128xbf16, #tpu.memory_space<vmem>>, %arg2: memref<8x48xbf16, #tpu.memory_space<vmem>>, %arg3: memref<8x128xf32, #tpu.memory_space<vmem>>, %arg4: memref<8x128xf32, #tpu.memory_space<vmem>>) attributes {dimension_semantics = [#tpu.dimension_semantics<parallel>], iteration_bounds = array<i64: 4>, scalar_prefetch = 0 : i64, scratch_operands = 0 : i64, tpu.core_type = #tpu.core_type<tc>, window_params = [{transform_indices = @transform_0, window_bounds = array<i64: 48, 128>}, {pipeline_mode = #tpu.pipeline_mode<synchronous>, transform_indices = @transform_1, window_bounds = array<i64: 8, 48>}, {transform_indices = @transform_2, window_bounds = array<i64: 8, 128>}, {transform_indices = @transform_3, window_bounds = array<i64: 8, 128>}]} {
    %c0 = arith.constant 0 : index
    %c0_0 = arith.constant 0 : index
    %0 = vector.load %arg2[%c0, %c0_0] : memref<8x48xbf16, #tpu.memory_space<vmem>>, vector<8x48xbf16>
    %c0_1 = arith.constant 0 : index
    %c0_2 = arith.constant 0 : index
    %1 = vector.load %arg1[%c0_1, %c0_2] : memref<48x128xbf16, #tpu.memory_space<vmem>>, vector<48x128xbf16>
    %cst = arith.constant dense<0.000000e+00> : vector<8x128xf32>
    %2 = tpu.matmul %0, %1, %cst {dimension_numbers = #tpu.dot_dimension_numbers<[1], [0], [0], [1], [0, 0, 1, 1], [], []>} : vector<8x48xbf16>, vector<48x128xbf16>, vector<8x128xf32> -> vector<8x128xf32>
    %c0_3 = arith.constant 0 : index
    %c0_4 = arith.constant 0 : index
    %3 = vector.load %arg3[%c0_3, %c0_4] : memref<8x128xf32, #tpu.memory_space<vmem>>, vector<8x128xf32>
    %4 = arith.addf %2, %3 : vector<8x128xf32>
    %c0_5 = arith.constant 0 : index
    %c0_6 = arith.constant 0 : index
    %5 = vector.load %arg4[%c0_5, %c0_6] : memref<8x128xf32, #tpu.memory_space<vmem>>, vector<8x128xf32>
    tpu.vector_store %arg4[%c0_5, %c0_6], %4 {strides = array<i32>} : memref<8x128xf32, #tpu.memory_space<vmem>>, vector<8x128xf32>,
    return
  }
  func.func @transform_0(%arg0: i32) -> (i32, i32) {
    %c0_i32 = arith.constant 0 : i32
    %c0_i32_0 = arith.constant 0 : i32
    return %c0_i32, %arg0 : i32, i32
  }
  func.func @transform_1(%arg0: i32) -> (i32, i32) {
    %c0_i32 = arith.constant 0 : i32
    %c0_i32_0 = arith.constant 0 : i32
    %c0_i32_1 = arith.constant 0 : i32
    return %c0_i32, %c0_i32_0 : i32, i32
  }
  func.func @transform_2(%arg0: i32) -> (i32, i32) {
    %c2_i32 = arith.constant 2 : i32
    %c0_i32 = arith.constant 0 : i32
    %0 = arith.cmpi eq, %c2_i32, %c0_i32 : i32
    %c1_i32 = arith.constant 1 : i32
    %1 = arith.select %0, %c1_i32, %c2_i32 : i32
    %2 = arith.remsi %arg0, %1 : i32
    %c0_i32_0 = arith.constant 0 : i32
    %3 = arith.cmpi ne, %2, %c0_i32_0 : i32
    %c0_i32_1 = arith.constant 0 : i32
    %4 = arith.cmpi slt, %2, %c0_i32_1 : i32
    %c0_i32_2 = arith.constant 0 : i32
    %5 = arith.cmpi slt, %1, %c0_i32_2 : i32
    %6 = arith.xori %4, %5 : i1
    %7 = arith.andi %6, %3 : i1
    %8 = arith.addi %2, %1 : i32
    %9 = arith.select %7, %8, %2 : i32
    %c0_i32_3 = arith.constant 0 : i32
    %c0_i32_4 = arith.constant 0 : i32
    return %c0_i32_3, %9 : i32, i32
  }
  func.func @transform_3(%arg0: i32) -> (i32, i32) {
    %c0_i32 = arith.constant 0 : i32
    %c0_i32_0 = arith.constant 0 : i32
    return %c0_i32, %arg0 : i32, i32
  }
}

</mosaic_0001>

<bundles_post_ra>
// kernel: tpu_custom_call.1
= control target key start
LH: loop header
LB: loop body
LE: loop exit
PB: predicated region body
PF: predicated region fallthrough
CT: control target
= control target key end

     0   :  { %s1127_s0 = inlined_call_operand.hbm [shape: bf16[48,512], index: 0, kind: input, shape index: {}]   ;;  %s1128_s1 = inlined_call_operand.hbm [shape: bf16[8,48], index: 1, kind: input, shape index: {}]   ;;  %s1129_s2 = inlined_call_operand.hbm [shape: f32[8,256], index: 2, kind: input, shape index: {}]   ;;  %s1130_s3 = inlined_call_operand.hbm [shape: f32[8,512], index: 3, kind: output, shape index: {}]  }
   0x1   :  { %1138 = sst [smem:[#allocation13_spill]] %s1127_s0 }
   0x2   :  { %8 = vsyncpa [#allocation3], 0 }
   0x3   :  { %10 = vsyncpa [#allocation3 + $0x1], 0 }
   0x4   :  { %11 = vsyncpa [#allocation6], 0 }
   0x5   :  { %12 = vsyncpa [#allocation4], 0 }
   0x6   :  { %14 = vsyncpa [#allocation4 + $0x1], 0  ;;  %s824_s12 = smov 0   ;;  %s826_s13 = smov 0  }
   0x7   :  { %s828_s14 = smov 0   ;;  %s830_s15 = smov 0  }
   0x8   :  { %s832_s16 = smov 0   ;;  %s834_s17 = smov 0  }
   0x9   :  { %s836_s18 = smov 0  }
   0xa LB: > { %s860_s19 = sadd.s32 1, %s793_s18   ;;  %s27_s20 = sadd.s32 1, %s789_s17  ;;  %s793_s18 = sphi %s836_s18, %s1167_s18   ;;  %s789_s17 = sphi %s834_s17, %s1166_s17   ;;  %s785_s16 = sphi %s832_s16, %s1165_s16   ;;  %s781_s15 = sphi %s830_s15, %s1164_s15   ;;  %s777_s14 = sphi %s828_s14, %s1163_s14   ;;  %s773_s13 = sphi %s826_s13, %s1162_s13   ;;  %s769_s12 = sphi %s824_s12, %s1161_s12  }
   0xb   : > { %s24_s21 = ssub.s32 %s793_s18, %s860_s19  ;;  %p34_p0 = scmp.ne.s32.totalorder %s789_s17, %s785_s16 }
   0xc   : > { %p25_p1 = scmp.eq.s32.totalorder %s24_s21, 0  ;;  %p1132_p2 = scmp.eq.s32.totalorder %s793_s18, 0 }
   0xd   : > { %p1131_p3 = scmp.lt.s32.totalorder %s793_s18, 4  ;;  %s172_s23 = sand.u32 1, %s793_s18  }
   0xe   : > { %s870_s22 = scalar_select %p25_p1, %s789_s17, %s27_s20  }
   0xf   : > { %p36_p4 = por %p1132_p2, %p34_p0  ;;  %s174_s24 = sand.u32 1, %s789_s17  }
  0x10   : > { %s511_s25 = smul.u32 24, %s174_s24  ;;  %s479_s26 = sshll.u32 %s793_s18, 6 }
  0x11   : > { %s1139_s0 = sld [smem:[#allocation13_spill]]  ;;  %p887_p5 = pnand %p1131_p3, %p36_p4 }
  0x12   : > { %s176_s4 = scalar_lea.vmem [#allocation2], %s511_s25  ;;  %s893_s6 = scalar_lea.sflag [#allocation3], %s172_s23 }
  0x13   : > { %s182_s5 = sshll.u32 %s176_s4, 4  ;;  %p609_p7 = pneg %p887_p5  ;;  %s891_s5 = int_to_ptr.vmem [resolvable:$true] %s182_s5 }
  0x17   : > { %s883_s29 = scalar_lea.hbm %s1139_s0, %s479_s26  ;;  %s612_s10 = scalar_lea.hbm %s1139_s0, 1536 }
  0x18   : > { %s607_s7 = scalar_lea.hbm %s883_s29, 384  ;;  %p613_p10 = scmp.lt.u32.totalorder %s883_s29, %s1139_s0 }
  0x19   : > { %p608_p6 = scmp.ne.s32.totalorder %s883_s29, %s607_s7  ;;  %p614_p11 = scmp.lt.u32.totalorder %s612_s10, %s607_s7 }
  0x1a   : > { %p616_p13 = scmp.lt.u32.totalorder %s607_s7, %s883_s29 }
  0x1b   : > { %p610_p8 = pnand %p609_p7, %p608_p6  ;;  %p615_p12 = por %p614_p11, %p613_p10 }
  0x1d   : > { %p611_p9 = pneg %p610_p8  ;;  %p617_p1 = por %p616_p13, %p615_p12 }
  0x1f   : > { %p618_p4 = pnand %p617_p1, %p611_p9 }
  0x21   : > { %621 = shalt.err (!%p618_p4)
}
  0x22   : > { %s622_s21 = scalar_lea.vmem %s891_s5, 384  ;;  %s795_s23 = smov [#allocation2]  }
  0x23   : > { %p623_p6 = scmp.ne.s32.totalorder %s891_s5, %s622_s21  ;;  %s627_s24 = sshll.u32 %s795_s23, 4  ;;  %s628_s24 = int_to_ptr.vmem [resolvable:$false] %s627_s24 }
  0x24   : > { %s629_s25 = scalar_lea.vmem %s628_s24, 768  ;;  %p630_p2 = scmp.lt.s32.totalorder %s891_s5, %s628_s24 }
  0x25   : > { %p625_p8 = pnand %p623_p6, %p609_p7  ;;  %p631_p10 = scmp.lt.s32.totalorder %s629_s25, %s622_s21 }
  0x27   : > { %p626_p3 = pneg %p625_p8  ;;  %p632_p11 = por %p631_p10, %p630_p2 }
  0x29   : > { %p633_p12 = pnand %p632_p11, %p626_p3 }
  0x2b   : > { %636 = shalt.err (!%p633_p12)
}
  0x2c   : > { %s796_s26 = smov 256   ;;  %s797_s27 = smov 64  }
  0x2d   : > { %s798_s28 = smov 4   ;;  %s922_s4 = sadd.s32 4294967295, %s793_s18  }
  0x2e   : > { %530 = dma.hbm_to_vmem [thread:$0]  (!%p887_p5), %s883_s29, 384, %s891_s5, %s893_s6, %s796_s26, %s797_s27, %s798_s28  }
  0x2f   : > { %s469_s7 = sadd.s32 4294967294, %s793_s18   ;;  %p40_p2 = scmp.ne.s32.totalorder %s785_s16, %s781_s15 }
  0x30   : > { %p1133_p3 = scmp.eq.s32.totalorder %s922_s4, 0  ;;  %p111_p7 = scmp.ne.s32.totalorder %s773_s13, %s769_s12 }
  0x31   : > { %p135_p9 = scmp.eq.s32.totalorder %s922_s4, 3  ;;  %p141_p13 = scmp.eq.s32.totalorder %s469_s7, 3 }
  0x32   : > { %p933_p1 = por %p1133_p3, %p40_p2  ;;  %p939_p5 = por %p111_p7, %p1133_p3 }
  0x33   : > { %p946_p4 = por %p135_p9, %p34_p0  ;;  %p950_p6 = por %p141_p13, %p40_p2 }
  0x34   : > { %s1141_s30 = scalar_select %p933_p1, 1, 0 }
  0x35   : > { %s1142_s29 = scalar_select %p939_p5, 1, 0 }
  0x36   : > { %s1143_s5 = scalar_select %p946_p4, 1, 0 }
  0x37   : > { %s1144_s12 = scalar_select %p950_p6, 1, 0 }
  0x38   : > { %p476_p8 = scmp.ge.s32.totalorder %s793_s18, 1  ;;  %p148_p10 = scmp.lt.s32.totalorder %s793_s18, 5 }
  0x39   : > { %s799_s9 = smov [#allocation5]   ;;  %s72_s11 = ssub.s32 0, %s793_s18 }
  0x3a   : > { %p956_p11 = pnand %p476_p8, %p148_p10  ;;  %s161_s10 = sshll.u32 %s799_s9, 4  ;;  %s162_s10 = int_to_ptr.vmem [resolvable:$true] %s161_s10 }
  0x3b   : > { %s470_s21 = smin.u32 %s793_s18, %s72_s11  ;;  %s637_s27 = scalar_lea.hbm %s1128_s1, 64 }
  0x3c   : > { %s1145_s8 = scalar_select %p956_p11, 1, 0 }
  0x3d   : > { %p523_p12 = pneg %p956_p11  ;;  %s74_s23 = sand.u32 1, %s470_s21  }
  0x3e   : > { %s75_s24 = ssub.s32 0, %s74_s23  ;;  %p638_p9 = scmp.ne.s32.totalorder %s1128_s1, %s637_s27 }
  0x3f   : > { %p966_p7 = pnand %p523_p12, %p1133_p3  ;;  %p644_p12 = scmp.lt.u32.totalorder %s637_s27, %s1128_s1 }
  0x41   : > { %p639_p13 = pneg %p966_p7 }
  0x43   : > { %p640_p8 = pnand %p639_p13, %p638_p9 }
  0x45   : > { %p641_p10 = pneg %p640_p8 }
  0x47   : > { %p646_p3 = pnand %p644_p12, %p641_p10 }
  0x49   : > { %649 = shalt.err (!%p646_p3)
}
  0x4a   : > { %s650_s11 = scalar_lea.vmem %s162_s10, 64  ;;  %p658_p4 = scmp.lt.s32.totalorder %s162_s10, %s162_s10 }
  0x4b   : > { %p651_p2 = scmp.ne.s32.totalorder %s162_s10, %s650_s11  ;;  %p659_p5 = scmp.lt.s32.totalorder %s650_s11, %s650_s11 }
  0x4d   : > { %p653_p0 = pnand %p651_p2, %p639_p13  ;;  %p660_p1 = por %p659_p5, %p658_p4 }
  0x4f   : > { %p654_p6 = pneg %p653_p0 }
  0x51   : > { %p661_p11 = pnand %p660_p1, %p654_p6 }
  0x53   : > { %664 = shalt.err (!%p661_p11)
}
  0x54   : > { %526 = dma.hbm_to_vmem [thread:$0]  (!%p966_p7), %s1128_s1, 64, %s162_s10, [#allocation6]  }
  0x55   : > { %p1147_p3 = scmp.lt.s32.totalorder %s793_s18, 0  ;;  %s84_s0 = ssub.s32 0, %s860_s19 }
  0x56   : > { %s473_s20 = smin.u32 %s84_s0, %s860_s19  ;;  %p105_p5 = scmp.ne.s32.totalorder %s777_s14, %s773_s13 }
  0x57   : > { %s1169_s24 = smov (!%p1147_p3, %s75_s24), %s74_s23  ;;  %s86_s28 = sand.u32 1, %s473_s20  }
  0x58   : > { %p472_p1 = scmp.lt.s32.totalorder %s1169_s24, 0  ;;  %s81_s27 = sadd.s32 2, %s1169_s24 }
  0x59   : > { %p1148_p4 = scmp.eq.s32.totalorder %s793_s18, 0  ;;  %s87_s7 = ssub.s32 0, %s86_s28 }
  0x5a   : > { %s1171_s27 = smov (!%p472_p1, %s81_s27), %s1169_s24  ;;  %s194_s9 = sand.u32 1, %s777_s14  }
  0x5b   : > { %p107_p6 = por %p105_p5, %p1148_p4  ;;  %p1149_p11 = scmp.lt.s32.totalorder %s860_s19, 0 }
  0x5c   : > { %s480_s11 = sshll.u32 %s194_s9, 3  ;;  %s484_s21 = sshll.u32 %s1171_s27, 7 }
  0x5d   : > { %s1173_s7 = smov (!%p1149_p11, %s87_s7), %s86_s28  ;;  %s1003_s26 = scalar_lea.hbm %s1129_s2, %s484_s21 }
  0x5e   : > { %p475_p0 = scmp.lt.s32.totalorder %s1173_s7, 0  ;;  %s93_s10 = sadd.s32 2, %s1173_s7 }
  0x5f   : > { %s196_s24 = scalar_lea.vmem [#allocation7], %s480_s11  ;;  %p1150_p7 = scmp.lt.s32.totalorder %s793_s18, 4 }
  0x60   : > { %s1175_s10 = smov (!%p475_p0, %s93_s10), %s1173_s7  ;;  %s215_s0 = sshll.u32 %s196_s24, 4  ;;  %s1011_s0 = int_to_ptr.vmem [resolvable:$true] %s215_s0 }
  0x61   : > { %p1007_p2 = pnand %p1150_p7, %p107_p6  ;;  %s95_s28 = ssub.s32 %s1171_s27, %s1175_s10 }
  0x62   : > { %p1013_p9 = scmp.eq.s32.totalorder %s95_s28, 0  ;;  %s665_s21 = scalar_lea.hbm %s1003_s26, 128 }
  0x63   : > { %p666_p13 = scmp.ne.s32.totalorder %s1003_s26, %s665_s21  ;;  %p667_p8 = pneg %p1007_p2 }
  0x64   : > { %s670_s23 = scalar_lea.hbm %s1129_s2, 256  ;;  %p671_p3 = scmp.lt.u32.totalorder %s1003_s26, %s1129_s2 }
  0x65   : > { %p668_p10 = pnand %p667_p8, %p666_p13  ;;  %p672_p1 = scmp.lt.u32.totalorder %s670_s23, %s665_s21 }
  0x66   : > { %p674_p4 = scmp.lt.u32.totalorder %s665_s21, %s1003_s26 }
  0x67   : > { %p669_p12 = pneg %p668_p10  ;;  %p673_p5 = por %p672_p1, %p671_p3 }
  0x69   : > { %p675_p6 = por %p674_p4, %p673_p5 }
  0x6b   : > { %p676_p11 = pnand %p675_p6, %p669_p12 }
  0x6d   : > { %679 = shalt.err (!%p676_p11)
}
  0x6e   : > { %s680_s10 = scalar_lea.vmem %s1011_s0, 128  ;;  %s800_s24 = smov [#allocation7]  }
  0x6f   : > { %p681_p0 = scmp.ne.s32.totalorder %s1011_s0, %s680_s10  ;;  %s685_s28 = sshll.u32 %s800_s24, 4  ;;  %s686_s28 = int_to_ptr.vmem [resolvable:$false] %s685_s28 }
  0x70   : > { %s687_s7 = scalar_lea.vmem %s686_s28, 256  ;;  %p688_p10 = scmp.lt.s32.totalorder %s1011_s0, %s686_s28 }
  0x71   : > { %p683_p7 = pnand %p681_p0, %p667_p8  ;;  %p689_p3 = scmp.lt.s32.totalorder %s687_s7, %s680_s10 }
  0x73   : > { %p684_p13 = pneg %p683_p7  ;;  %p690_p1 = por %p689_p3, %p688_p10 }
  0x75   : > { %p691_p5 = pnand %p690_p1, %p684_p13 }
  0x77   : > { %694 = shalt.err (!%p691_p5)
}
  0x78   : > { %533 = dma.hbm_to_vmem [thread:$0]  (!%p1007_p2), %s1003_s26, 128, %s1011_s0, %s893_s6  }
  0x79   : > { %s1153_s21 = sadd.s32 1, %s777_s14  ;;  %p1154_p8 = scmp.ne.s32.totalorder %s1145_s8, 0 }
  0x7a   : > { %s1048_s11 = scalar_select %p1013_p9, %s777_s14, %s1153_s21  }
  0x7b   : > { %224 = sbr.rel (%p1154_p8) target bundleno = 379 (0x17b), region = 32  ;;  %s226_s23 = sand.u32 (!%p1154_p8), 1, %s922_s4  }
  0x7c   : > { %s1054_s25 = sand.u32 (!%p1154_p8), 1, %s785_s16   ;;  %s227_s27 = scalar_lea.sflag (!%p1154_p8), [#allocation3], %s226_s23 }
  0x7d   : > { %s512_s20 = smul.u32 (!%p1154_p8), 24, %s1054_s25  ;;  %p1155_p12 = scmp.ne.s32.totalorder (!%p1154_p8), %s1141_s30, 0 }
  0x7f   : > { %s230_s10 = scalar_lea.vmem (!%p1154_p8), [#allocation2], %s512_s20 }
  0x82   : > { %752 = dma.done.wait (%p1155_p12), %s227_s27, 384  }
  0x83   : > { %754 = vsyncadd (%p1155_p12), %s227_s27, 4294966912  ;;  %p1156_p2 = scmp.eq.s32.totalorder %s922_s4, 0 }
  0x85   : > { %756 = dma.done.wait (%p1156_p2), [#allocation6], 64   ;;  %p1157_p9 = pmov %p1156_p2 }
  0x86   : > { %s241_s6 = sand.u32 1, %s773_s13   ;;  %p1158_p4 = scmp.ne.s32.totalorder %s1142_s29, 0 }
  0x87   : > { %758 = vsyncadd (%p1157_p9), [#allocation6], 4294967232  ;;  %s487_s8 = sshll.u32 %s241_s6, 3 }
  0x88   : > { %s243_s26 = scalar_lea.vmem [#allocation7], %s487_s8 }
  0x89   : > { %760 = dma.done.wait (%p1158_p4), %s227_s27, 128  }
  0x8a   : > { %762 = vsyncadd (%p1158_p4), %s227_s27, 4294967168  ;;  %v801_v0 = vmov 0.0   ;;  %vm802_vm0 = vmmov 0   ;;  %v604_v1 = vld [vmem:[%s230_s10] sm:$0xff]   ;;  %v605_v2 = vld [vmem:[%s230_s10 + $0x8] sm:$0xff]   ;;  %vm310_vm1 = vcmask 392192  }
  0x8b   : > { %501 = vmatprep.subr.bf16.mxu0 %v801_v0  ;;  %507 = vmatprep.mubr.msk.bf16.mxu0 %vm802_vm0, %v801_v0  ;;  %v606_v3 = vld [vmem:[%s230_s10 + $0x10] sm:$0xff]   ;;  %s488_s30 = sshll.u32 %s1054_s25, 3  ;;  %s494_s29 = sshll.u32 %s922_s4, 7 }
  0x8c   : > { %502 = vmatpush3.bf16.msra.mxu0 %v604_v1  ;;  %v284_v4 = vld [vmem:[#allocation5] sm:$0xf]  ;;  %v291_v5 = vld [vmem:[%s243_s26] sm:$0xff]  ;;  %s270_s0 = scalar_lea.vmem [#allocation8], %s488_s30  ;;  %s1075_s7 = scalar_lea.hbm %s1130_s3, %s494_s29 }
  0x8d   : > { %503 = vmatprep.subr.bf16.mxu0 %v801_v0  ;;  %s369_s9 = sshll.u32 %s270_s0, 4  ;;  %s356_s21 = scalar_lea.sflag [#allocation4], %s1054_s25  ;;  %s1077_s9 = int_to_ptr.vmem [resolvable:$true] %s369_s9 }
  0x8e   : > { %s695_s4 = scalar_lea.vmem %s1077_s9, 128  ;;  %p1159_p11 = scmp.ne.s32.totalorder %s1143_s5, 0 }
  0x8f   : > { %p696_p6 = scmp.ne.s32.totalorder %s1077_s9, %s695_s4  ;;  %s803_s23 = smov [#allocation8]  }
  0x90   : > { %504 = vmatpush3.bf16.msra.mxu0 %v605_v2  ;;  %s699_s20 = sshll.u32 %s803_s23, 4  ;;  %s700_s20 = int_to_ptr.vmem [resolvable:$false] %s699_s20 }
  0x91   : > { %505 = vmatprep.subr.bf16.mxu0 %v801_v0  ;;  %p697_p0 = pnand %p696_p6, %p1159_p11  ;;  %s701_s27 = scalar_lea.vmem %s700_s20, 256 }
  0x92   : > { %p702_p13 = scmp.lt.s32.totalorder %s1077_s9, %s700_s20  ;;  %p703_p10 = scmp.lt.s32.totalorder %s701_s27, %s695_s4 }
  0x93   : > { %p698_p7 = pneg %p697_p0 }
  0x94   : > { %506 = vmatpush3.bf16.msra.mxu0 %v606_v3  ;;  %p704_p3 = por %p703_p10, %p702_p13 }
  0x96   : > { %p705_p1 = pnand %p704_p3, %p698_p7 }
  0x97   : > { %508 = vmatmul.mubr.msk.bf16.vlgmr.msra.gmra.mrb[0].mxu0 %vm310_vm1, %v284_v4 }
 0x16a   : > { %v348_v6 = vpop.f32.mrb[0].mxu0 }
 0x16b   : > { %v349_v7 = vadd.f32 %v348_v6, %v291_v5  ;;  %v509_v8 = vpop.f32.mrb[1].mxu0 }
 0x16c   : > { %v351_v9 = vpop.f32.mrb[2].mxu0 }
 0x16d   : > { %354 = vst [vmem:[%s270_s0] sm:$0xff] %v349_v7  ;;  %v510_v10 = vpop.f32.mrb[3].mxu0 }
 0x16e   : > { %708 = shalt.err (!%p705_p1)
}
 0x16f   : > { %s709_s25 = scalar_lea.hbm %s1075_s7, 128  ;;  %s713_s8 = scalar_lea.hbm %s1130_s3, 512 }
 0x170   : > { %p710_p5 = scmp.ne.s32.totalorder %s1075_s7, %s709_s25  ;;  %p714_p2 = scmp.lt.u32.totalorder %s1075_s7, %s1130_s3 }
 0x171   : > { %p715_p9 = scmp.lt.u32.totalorder %s713_s8, %s709_s25  ;;  %p717_p6 = scmp.lt.u32.totalorder %s709_s25, %s1075_s7 }
 0x172   : > { %p711_p8 = pnand %p710_p5, %p1159_p11 }
 0x173   : > { %p716_p4 = por %p715_p9, %p714_p2 }
 0x174   : > { %p712_p12 = pneg %p711_p8 }
 0x175   : > { %p718_p0 = por %p717_p6, %p716_p4 }
 0x177   : > { %p719_p7 = pnand %p718_p0, %p712_p12 }
 0x179   : > { %722 = shalt.err (!%p719_p7)
}
 0x17a   : > { %521 = dma.vmem_to_hbm [thread:$0]  (%p1159_p11), %s1077_s9, 128, %s1075_s7, %s356_s21  }
 0x17b PF: > { %p541_p13 = scmp.ge.s32.totalorder %s793_s18, 2  ;;  %s381_s29 = sand.u32 1, %s781_s15  }
 0x17c   : > { %p1160_p10 = scmp.ne.s32.totalorder %s1144_s12, 0  ;;  %s382_s0 = scalar_lea.sflag [#allocation4], %s381_s29 }
 0x17e   : > { %p535_p3 = pnand %p541_p13, %p1160_p10 }
 0x180   : > { %764 = dma.done.wait (!%p535_p3), %s382_s0, 128  }
 0x181   : > { %766 = vsyncadd (!%p535_p3), %s382_s0, 4294967168  ;;  %p17_p11 = scmp.ge.s32.totalorder %s860_s19, 6   ;;  %s1161_s12 = smov %s773_s13 }
 0x182   : > { %s1162_s13 = smov %s777_s14  ;;  %s1163_s14 = smov %s1048_s11 }
 0x183   : > { %s1164_s15 = smov %s785_s16  ;;  %s1165_s16 = smov %s789_s17 }
 0x184   : > { %s1166_s17 = smov %s870_s22  ;;  %s1167_s18 = smov %s860_s19 }
 0x185   :  { %19 = sbr.rel (!%p17_p11) target bundleno = 10 (0xa), region = 92 }
 0x18c   :  { %387 = vsyncpa [#allocation3], 1 }
 0x18d   :  { %389 = vsyncpa [#allocation3 + $0x1], 1 }
 0x18e   :  { %390 = vsyncpa [#allocation6], 1 }
 0x18f   :  { %391 = vsyncpa [#allocation4], 1 }
 0x190   :  { %393 = vsyncpa [#allocation4 + $0x1], 1 }

// kernel: tpu_custom_call.1
= control target key start
LH: loop header
LB: loop body
LE: loop exit
PB: predicated region body
PF: predicated region fallthrough
CT: control target
= control target key end

     0   :  { %s1127_s0 = inlined_call_operand.hbm [shape: bf16[48,512], index: 0, kind: input, shape index: {}]   ;;  %s1128_s1 = inlined_call_operand.hbm [shape: bf16[8,48], index: 1, kind: input, shape index: {}]   ;;  %s1129_s2 = inlined_call_operand.hbm [shape: f32[8,256], index: 2, kind: input, shape index: {}]   ;;  %s1130_s3 = inlined_call_operand.hbm [shape: f32[8,512], index: 3, kind: output, shape index: {}]  }
   0x1   :  { %1138 = sst [smem:[#allocation13_spill]] %s1127_s0 }
   0x2   :  { %8 = vsyncpa [#allocation3], 0 }
   0x3   :  { %10 = vsyncpa [#allocation3 + $0x1], 0 }
   0x4   :  { %11 = vsyncpa [#allocation6], 0 }
   0x5   :  { %12 = vsyncpa [#allocation4], 0 }
   0x6   :  { %14 = vsyncpa [#allocation4 + $0x1], 0  ;;  %s824_s12 = smov 0   ;;  %s826_s13 = smov 0  }
   0x7   :  { %s828_s14 = smov 0   ;;  %s830_s15 = smov 0  }
   0x8   :  { %s832_s16 = smov 0   ;;  %s834_s17 = smov 0  }
   0x9   :  { %s836_s18 = smov 0  }
   0xa LB: > { %s860_s19 = sadd.s32 1, %s793_s18   ;;  %s27_s20 = sadd.s32 1, %s789_s17  ;;  %s793_s18 = sphi %s836_s18, %s1167_s18   ;;  %s789_s17 = sphi %s834_s17, %s1166_s17   ;;  %s785_s16 = sphi %s832_s16, %s1165_s16   ;;  %s781_s15 = sphi %s830_s15, %s1164_s15   ;;  %s777_s14 = sphi %s828_s14, %s1163_s14   ;;  %s773_s13 = sphi %s826_s13, %s1162_s13   ;;  %s769_s12 = sphi %s824_s12, %s1161_s12  }
   0xb   : > { %s24_s21 = ssub.s32 %s793_s18, %s860_s19  ;;  %p34_p0 = scmp.ne.s32.totalorder %s789_s17, %s785_s16 }
   0xc   : > { %p25_p1 = scmp.eq.s32.totalorder %s24_s21, 0  ;;  %p1132_p2 = scmp.eq.s32.totalorder %s793_s18, 0 }
   0xd   : > { %p1131_p3 = scmp.lt.s32.totalorder %s793_s18, 4  ;;  %s172_s23 = sand.u32 1, %s793_s18  }
   0xe   : > { %s870_s22 = scalar_select %p25_p1, %s789_s17, %s27_s20  }
   0xf   : > { %p36_p4 = por %p1132_p2, %p34_p0  ;;  %s174_s24 = sand.u32 1, %s789_s17  }
  0x10   : > { %s511_s25 = smul.u32 24, %s174_s24  ;;  %s479_s26 = sshll.u32 %s793_s18, 6 }
  0x11   : > { %s1139_s0 = sld [smem:[#allocation13_spill]]  ;;  %p887_p5 = pnand %p1131_p3, %p36_p4 }
  0x12   : > { %s176_s4 = scalar_lea.vmem [#allocation2], %s511_s25  ;;  %s893_s6 = scalar_lea.sflag [#allocation3], %s172_s23 }
  0x13   : > { %s182_s5 = sshll.u32 %s176_s4, 4  ;;  %p609_p7 = pneg %p887_p5  ;;  %s891_s5 = int_to_ptr.vmem [resolvable:$true] %s182_s5 }
  0x17   : > { %s883_s29 = scalar_lea.hbm %s1139_s0, %s479_s26  ;;  %s612_s10 = scalar_lea.hbm %s1139_s0, 1536 }
  0x18   : > { %s607_s7 = scalar_lea.hbm %s883_s29, 384  ;;  %p613_p10 = scmp.lt.u32.totalorder %s883_s29, %s1139_s0 }
  0x19   : > { %p608_p6 = scmp.ne.s32.totalorder %s883_s29, %s607_s7  ;;  %p614_p11 = scmp.lt.u32.totalorder %s612_s10, %s607_s7 }
  0x1a   : > { %p616_p13 = scmp.lt.u32.totalorder %s607_s7, %s883_s29 }
  0x1b   : > { %p610_p8 = pnand %p609_p7, %p608_p6  ;;  %p615_p12 = por %p614_p11, %p613_p10 }
  0x1d   : > { %p611_p9 = pneg %p610_p8  ;;  %p617_p1 = por %p616_p13, %p615_p12 }
  0x1f   : > { %p618_p4 = pnand %p617_p1, %p611_p9 }
  0x21   : > { %621 = shalt.err (!%p618_p4)
}
  0x22   : > { %s622_s21 = scalar_lea.vmem %s891_s5, 384  ;;  %s795_s23 = smov [#allocation2]  }
  0x23   : > { %p623_p6 = scmp.ne.s32.totalorder %s891_s5, %s622_s21  ;;  %s627_s24 = sshll.u32 %s795_s23, 4  ;;  %s628_s24 = int_to_ptr.vmem [resolvable:$false] %s627_s24 }
  0x24   : > { %s629_s25 = scalar_lea.vmem %s628_s24, 768  ;;  %p630_p2 = scmp.lt.s32.totalorder %s891_s5, %s628_s24 }
  0x25   : > { %p625_p8 = pnand %p623_p6, %p609_p7  ;;  %p631_p10 = scmp.lt.s32.totalorder %s629_s25, %s622_s21 }
  0x27   : > { %p626_p3 = pneg %p625_p8  ;;  %p632_p11 = por %p631_p10, %p630_p2 }
  0x29   : > { %p633_p12 = pnand %p632_p11, %p626_p3 }
  0x2b   : > { %636 = shalt.err (!%p633_p12)
}
  0x2c   : > { %s796_s26 = smov 256   ;;  %s797_s27 = smov 64  }
  0x2d   : > { %s798_s28 = smov 4   ;;  %s922_s4 = sadd.s32 4294967295, %s793_s18  }
  0x2e   : > { %530 = dma.hbm_to_vmem [thread:$0]  (!%p887_p5), %s883_s29, 384, %s891_s5, %s893_s6, %s796_s26, %s797_s27, %s798_s28  }
  0x2f   : > { %s469_s7 = sadd.s32 4294967294, %s793_s18   ;;  %p40_p2 = scmp.ne.s32.totalorder %s785_s16, %s781_s15 }
  0x30   : > { %p1133_p3 = scmp.eq.s32.totalorder %s922_s4, 0  ;;  %p111_p7 = scmp.ne.s32.totalorder %s773_s13, %s769_s12 }
  0x31   : > { %p135_p9 = scmp.eq.s32.totalorder %s922_s4, 3  ;;  %p141_p13 = scmp.eq.s32.totalorder %s469_s7, 3 }
  0x32   : > { %p933_p1 = por %p1133_p3, %p40_p2  ;;  %p939_p5 = por %p111_p7, %p1133_p3 }
  0x33   : > { %p946_p4 = por %p135_p9, %p34_p0  ;;  %p950_p6 = por %p141_p13, %p40_p2 }
  0x34   : > { %s1141_s30 = scalar_select %p933_p1, 1, 0 }
  0x35   : > { %s1142_s29 = scalar_select %p939_p5, 1, 0 }
  0x36   : > { %s1143_s5 = scalar_select %p946_p4, 1, 0 }
  0x37   : > { %s1144_s12 = scalar_select %p950_p6, 1, 0 }
  0x38   : > { %p476_p8 = scmp.ge.s32.totalorder %s793_s18, 1  ;;  %p148_p10 = scmp.lt.s32.totalorder %s793_s18, 5 }
  0x39   : > { %s799_s9 = smov [#allocation5]   ;;  %s72_s11 = ssub.s32 0, %s793_s18 }
  0x3a   : > { %p956_p11 = pnand %p476_p8, %p148_p10  ;;  %s161_s10 = sshll.u32 %s799_s9, 4  ;;  %s162_s10 = int_to_ptr.vmem [resolvable:$true] %s161_s10 }
  0x3b   : > { %s470_s21 = smin.u32 %s793_s18, %s72_s11  ;;  %s637_s27 = scalar_lea.hbm %s1128_s1, 64 }
  0x3c   : > { %s1145_s8 = scalar_select %p956_p11, 1, 0 }
  0x3d   : > { %p523_p12 = pneg %p956_p11  ;;  %s74_s23 = sand.u32 1, %s470_s21  }
  0x3e   : > { %s75_s24 = ssub.s32 0, %s74_s23  ;;  %p638_p9 = scmp.ne.s32.totalorder %s1128_s1, %s637_s27 }
  0x3f   : > { %p966_p7 = pnand %p523_p12, %p1133_p3  ;;  %p644_p12 = scmp.lt.u32.totalorder %s637_s27, %s1128_s1 }
  0x41   : > { %p639_p13 = pneg %p966_p7 }
  0x43   : > { %p640_p8 = pnand %p639_p13, %p638_p9 }
  0x45   : > { %p641_p10 = pneg %p640_p8 }
  0x47   : > { %p646_p3 = pnand %p644_p12, %p641_p10 }
  0x49   : > { %649 = shalt.err (!%p646_p3)
}
  0x4a   : > { %s650_s11 = scalar_lea.vmem %s162_s10, 64  ;;  %p658_p4 = scmp.lt.s32.totalorder %s162_s10, %s162_s10 }
  0x4b   : > { %p651_p2 = scmp.ne.s32.totalorder %s162_s10, %s650_s11  ;;  %p659_p5 = scmp.lt.s32.totalorder %s650_s11, %s650_s11 }
  0x4d   : > { %p653_p0 = pnand %p651_p2, %p639_p13  ;;  %p660_p1 = por %p659_p5, %p658_p4 }
  0x4f   : > { %p654_p6 = pneg %p653_p0 }
  0x51   : > { %p661_p11 = pnand %p660_p1, %p654_p6 }
  0x53   : > { %664 = shalt.err (!%p661_p11)
}
  0x54   : > { %526 = dma.hbm_to_vmem [thread:$0]  (!%p966_p7), %s1128_s1, 64, %s162_s10, [#allocation6]  }
  0x55   : > { %p1147_p3 = scmp.lt.s32.totalorder %s793_s18, 0  ;;  %s84_s0 = ssub.s32 0, %s860_s19 }
  0x56   : > { %s473_s20 = smin.u32 %s84_s0, %s860_s19  ;;  %p105_p5 = scmp.ne.s32.totalorder %s777_s14, %s773_s13 }
  0x57   : > { %s1169_s24 = smov (!%p1147_p3, %s75_s24), %s74_s23  ;;  %s86_s28 = sand.u32 1, %s473_s20  }
  0x58   : > { %p472_p1 = scmp.lt.s32.totalorder %s1169_s24, 0  ;;  %s81_s27 = sadd.s32 2, %s1169_s24 }
  0x59   : > { %p1148_p4 = scmp.eq.s32.totalorder %s793_s18, 0  ;;  %s87_s7 = ssub.s32 0, %s86_s28 }
  0x5a   : > { %s1171_s27 = smov (!%p472_p1, %s81_s27), %s1169_s24  ;;  %s194_s9 = sand.u32 1, %s777_s14  }
  0x5b   : > { %p107_p6 = por %p105_p5, %p1148_p4  ;;  %p1149_p11 = scmp.lt.s32.totalorder %s860_s19, 0 }
  0x5c   : > { %s480_s11 = sshll.u32 %s194_s9, 3  ;;  %s484_s21 = sshll.u32 %s1171_s27, 7 }
  0x5d   : > { %s1173_s7 = smov (!%p1149_p11, %s87_s7), %s86_s28  ;;  %s1003_s26 = scalar_lea.hbm %s1129_s2, %s484_s21 }
  0x5e   : > { %p475_p0 = scmp.lt.s32.totalorder %s1173_s7, 0  ;;  %s93_s10 = sadd.s32 2, %s1173_s7 }
  0x5f   : > { %s196_s24 = scalar_lea.vmem [#allocation7], %s480_s11  ;;  %p1150_p7 = scmp.lt.s32.totalorder %s793_s18, 4 }
  0x60   : > { %s1175_s10 = smov (!%p475_p0, %s93_s10), %s1173_s7  ;;  %s215_s0 = sshll.u32 %s196_s24, 4  ;;  %s1011_s0 = int_to_ptr.vmem [resolvable:$true] %s215_s0 }
  0x61   : > { %p1007_p2 = pnand %p1150_p7, %p107_p6  ;;  %s95_s28 = ssub.s32 %s1171_s27, %s1175_s10 }
  0x62   : > { %p1013_p9 = scmp.eq.s32.totalorder %s95_s28, 0  ;;  %s665_s21 = scalar_lea.hbm %s1003_s26, 128 }
  0x63   : > { %p666_p13 = scmp.ne.s32.totalorder %s1003_s26, %s665_s21  ;;  %p667_p8 = pneg %p1007_p2 }
  0x64   : > { %s670_s23 = scalar_lea.hbm %s1129_s2, 256  ;;  %p671_p3 = scmp.lt.u32.totalorder %s1003_s26, %s1129_s2 }
  0x65   : > { %p668_p10 = pnand %p667_p8, %p666_p13  ;;  %p672_p1 = scmp.lt.u32.totalorder %s670_s23, %s665_s21 }
  0x66   : > { %p674_p4 = scmp.lt.u32.totalorder %s665_s21, %s1003_s26 }
  0x67   : > { %p669_p12 = pneg %p668_p10  ;;  %p673_p5 = por %p672_p1, %p671_p3 }
  0x69   : > { %p675_p6 = por %p674_p4, %p673_p5 }
  0x6b   : > { %p676_p11 = pnand %p675_p6, %p669_p12 }
  0x6d   : > { %679 = shalt.err (!%p676_p11)
}
  0x6e   : > { %s680_s10 = scalar_lea.vmem %s1011_s0, 128  ;;  %s800_s24 = smov [#allocation7]  }
  0x6f   : > { %p681_p0 = scmp.ne.s32.totalorder %s1011_s0, %s680_s10  ;;  %s685_s28 = sshll.u32 %s800_s24, 4  ;;  %s686_s28 = int_to_ptr.vmem [resolvable:$false] %s685_s28 }
  0x70   : > { %s687_s7 = scalar_lea.vmem %s686_s28, 256  ;;  %p688_p10 = scmp.lt.s32.totalorder %s1011_s0, %s686_s28 }
  0x71   : > { %p683_p7 = pnand %p681_p0, %p667_p8  ;;  %p689_p3 = scmp.lt.s32.totalorder %s687_s7, %s680_s10 }
  0x73   : > { %p684_p13 = pneg %p683_p7  ;;  %p690_p1 = por %p689_p3, %p688_p10 }
  0x75   : > { %p691_p5 = pnand %p690_p1, %p684_p13 }
  0x77   : > { %694 = shalt.err (!%p691_p5)
}
  0x78   : > { %533 = dma.hbm_to_vmem [thread:$0]  (!%p1007_p2), %s1003_s26, 128, %s1011_s0, %s893_s6  }
  0x79   : > { %s1153_s21 = sadd.s32 1, %s777_s14  ;;  %p1154_p8 = scmp.ne.s32.totalorder %s1145_s8, 0 }
  0x7a   : > { %s1048_s11 = scalar_select %p1013_p9, %s777_s14, %s1153_s21  }
  0x7b   : > { %224 = sbr.rel (%p1154_p8) target bundleno = 379 (0x17b), region = 32  ;;  %s226_s23 = sand.u32 (!%p1154_p8), 1, %s922_s4  }
  0x7c   : > { %s1054_s25 = sand.u32 (!%p1154_p8), 1, %s785_s16   ;;  %s227_s27 = scalar_lea.sflag (!%p1154_p8), [#allocation3], %s226_s23 }
  0x7d   : > { %s512_s20 = smul.u32 (!%p1154_p8), 24, %s1054_s25  ;;  %p1155_p12 = scmp.ne.s32.totalorder (!%p1154_p8), %s1141_s30, 0 }
  0x7f   : > { %s230_s10 = scalar_lea.vmem (!%p1154_p8), [#allocation2], %s512_s20 }
  0x82   : > { %752 = dma.done.wait (%p1155_p12), %s227_s27, 384  }
  0x83   : > { %754 = vsyncadd (%p1155_p12), %s227_s27, 4294966912  ;;  %p1156_p2 = scmp.eq.s32.totalorder %s922_s4, 0 }
  0x85   : > { %756 = dma.done.wait (%p1156_p2), [#allocation6], 64   ;;  %p1157_p9 = pmov %p1156_p2 }
  0x86   : > { %s241_s6 = sand.u32 1, %s773_s13   ;;  %p1158_p4 = scmp.ne.s32.totalorder %s1142_s29, 0 }
  0x87   : > { %758 = vsyncadd (%p1157_p9), [#allocation6], 4294967232  ;;  %s487_s8 = sshll.u32 %s241_s6, 3 }
  0x88   : > { %s243_s26 = scalar_lea.vmem [#allocation7], %s487_s8 }
  0x89   : > { %760 = dma.done.wait (%p1158_p4), %s227_s27, 128  }
  0x8a   : > { %762 = vsyncadd (%p1158_p4), %s227_s27, 4294967168  ;;  %v801_v0 = vmov 0.0   ;;  %vm802_vm0 = vmmov 0   ;;  %v604_v1 = vld [vmem:[%s230_s10] sm:$0xff]   ;;  %v605_v2 = vld [vmem:[%s230_s10 + $0x8] sm:$0xff]   ;;  %vm310_vm1 = vcmask 392192  }
  0x8b   : > { %501 = vmatprep.subr.bf16.mxu0 %v801_v0  ;;  %507 = vmatprep.mubr.msk.bf16.mxu0 %vm802_vm0, %v801_v0  ;;  %v606_v3 = vld [vmem:[%s230_s10 + $0x10] sm:$0xff]   ;;  %s488_s30 = sshll.u32 %s1054_s25, 3  ;;  %s494_s29 = sshll.u32 %s922_s4, 7 }
  0x8c   : > { %502 = vmatpush3.bf16.msra.mxu0 %v604_v1  ;;  %v284_v4 = vld [vmem:[#allocation5] sm:$0xf]  ;;  %v291_v5 = vld [vmem:[%s243_s26] sm:$0xff]  ;;  %s270_s0 = scalar_lea.vmem [#allocation8], %s488_s30  ;;  %s1075_s7 = scalar_lea.hbm %s1130_s3, %s494_s29 }
  0x8d   : > { %503 = vmatprep.subr.bf16.mxu0 %v801_v0  ;;  %s369_s9 = sshll.u32 %s270_s0, 4  ;;  %s356_s21 = scalar_lea.sflag [#allocation4], %s1054_s25  ;;  %s1077_s9 = int_to_ptr.vmem [resolvable:$true] %s369_s9 }
  0x8e   : > { %s695_s4 = scalar_lea.vmem %s1077_s9, 128  ;;  %p1159_p11 = scmp.ne.s32.totalorder %s1143_s5, 0 }
  0x8f   : > { %p696_p6 = scmp.ne.s32.totalorder %s1077_s9, %s695_s4  ;;  %s803_s23 = smov [#allocation8]  }
  0x90   : > { %504 = vmatpush3.bf16.msra.mxu0 %v605_v2  ;;  %s699_s20 = sshll.u32 %s803_s23, 4  ;;  %s700_s20 = int_to_ptr.vmem [resolvable:$false] %s699_s20 }
  0x91   : > { %505 = vmatprep.subr.bf16.mxu0 %v801_v0  ;;  %p697_p0 = pnand %p696_p6, %p1159_p11  ;;  %s701_s27 = scalar_lea.vmem %s700_s20, 256 }
  0x92   : > { %p702_p13 = scmp.lt.s32.totalorder %s1077_s9, %s700_s20  ;;  %p703_p10 = scmp.lt.s32.totalorder %s701_s27, %s695_s4 }
  0x93   : > { %p698_p7 = pneg %p697_p0 }
  0x94   : > { %506 = vmatpush3.bf16.msra.mxu0 %v606_v3  ;;  %p704_p3 = por %p703_p10, %p702_p13 }
  0x96   : > { %p705_p1 = pnand %p704_p3, %p698_p7 }
  0x97   : > { %508 = vmatmul.mubr.msk.bf16.vlgmr.msra.gmra.mrb[0].mxu0 %vm310_vm1, %v284_v4 }
 0x16a   : > { %v348_v6 = vpop.f32.mrb[0].mxu0 }
 0x16b   : > { %v349_v7 = vadd.f32 %v348_v6, %v291_v5  ;;  %v509_v8 = vpop.f32.mrb[1].mxu0 }
 0x16c   : > { %v351_v9 = vpop.f32.mrb[2].mxu0 }
 0x16d   : > { %354 = vst [vmem:[%s270_s0] sm:$0xff] %v349_v7  ;;  %v510_v10 = vpop.f32.mrb[3].mxu0 }
 0x16e   : > { %708 = shalt.err (!%p705_p1)
}
 0x16f   : > { %s709_s25 = scalar_lea.hbm %s1075_s7, 128  ;;  %s713_s8 = scalar_lea.hbm %s1130_s3, 512 }
 0x170   : > { %p710_p5 = scmp.ne.s32.totalorder %s1075_s7, %s709_s25  ;;  %p714_p2 = scmp.lt.u32.totalorder %s1075_s7, %s1130_s3 }
 0x171   : > { %p715_p9 = scmp.lt.u32.totalorder %s713_s8, %s709_s25  ;;  %p717_p6 = scmp.lt.u32.totalorder %s709_s25, %s1075_s7 }
 0x172   : > { %p711_p8 = pnand %p710_p5, %p1159_p11 }
 0x173   : > { %p716_p4 = por %p715_p9, %p714_p2 }
 0x174   : > { %p712_p12 = pneg %p711_p8 }
 0x175   : > { %p718_p0 = por %p717_p6, %p716_p4 }
 0x177   : > { %p719_p7 = pnand %p718_p0, %p712_p12 }
 0x179   : > { %722 = shalt.err (!%p719_p7)
}
 0x17a   : > { %521 = dma.vmem_to_hbm [thread:$0]  (%p1159_p11), %s1077_s9, 128, %s1075_s7, %s356_s21  }
 0x17b PF: > { %p541_p13 = scmp.ge.s32.totalorder %s793_s18, 2  ;;  %s381_s29 = sand.u32 1, %s781_s15  }
 0x17c   : > { %p1160_p10 = scmp.ne.s32.totalorder %s1144_s12, 0  ;;  %s382_s0 = scalar_lea.sflag [#allocation4], %s381_s29 }
 0x17e   : > { %p535_p3 = pnand %p541_p13, %p1160_p10 }
 0x180   : > { %764 = dma.done.wait (!%p535_p3), %s382_s0, 128  }
 0x181   : > { %766 = vsyncadd (!%p535_p3), %s382_s0, 4294967168  ;;  %p17_p11 = scmp.ge.s32.totalorder %s860_s19, 6   ;;  %s1161_s12 = smov %s773_s13 }
 0x182   : > { %s1162_s13 = smov %s777_s14  ;;  %s1163_s14 = smov %s1048_s11 }
 0x183   : > { %s1164_s15 = smov %s785_s16  ;;  %s1165_s16 = smov %s789_s17 }
 0x184   : > { %s1166_s17 = smov %s870_s22  ;;  %s1167_s18 = smov %s860_s19 }
 0x185   :  { %19 = sbr.rel (!%p17_p11) target bundleno = 10 (0xa), region = 92 }
 0x18c   :  { %387 = vsyncpa [#allocation3], 1 }
 0x18d   :  { %389 = vsyncpa [#allocation3 + $0x1], 1 }
 0x18e   :  { %390 = vsyncpa [#allocation6], 1 }
 0x18f   :  { %391 = vsyncpa [#allocation4], 1 }
 0x190   :  { %393 = vsyncpa [#allocation4 + $0x1], 1 }

</bundles_post_ra>
